<compile_context>
chip_gen: v7x
topology: tpu7x:2x2x1
jax: 0.10.0
libtpu: 0.0.40
codegen_flags: <defaults>
</compile_context>

<pallas_src>
import jax
import jax.numpy as jnp
from jax.experimental import pallas as pl
from jax.experimental.pallas import tpu as pltpu

LEAKY_SLOPE = 0.01   # torch.nn.LeakyReLU default negative_slope
_PARAM_LANES = 128   # lane width of the packed parameter buffer


def _round_up(n, m):
    return ((n + m - 1) // m) * m


def _cdiv(a, b):
    return (a + b - 1) // b


def _leaky_relu(h):
    # 0 < slope < 1  =>  LeakyReLU(h) == max(h, slope*h): 2 VALU ops vs 3 for where().
    return jnp.maximum(h, LEAKY_SLOPE * h)


# ---------------------------------------------------------------------------
# Parameter packing: all weights (stored transposed) and biases (stored as
# column vectors) live in one zero-padded f32 buffer of shape (rows, 128).
# Zero padding guarantees that any MXU K-padding reads zeros.
# ---------------------------------------------------------------------------
def _param_offsets(d_in, h1, h2):
    r_w1 = 0                               # w1^T : (h1, d_in)
    r_w2 = r_w1 + _round_up(h1, 8)         # w2^T : (h2, h1)
    r_w3 = r_w2 + _round_up(h2, 8)         # w3   : (h2, 1) column
    r_b1 = r_w3 + _round_up(h2, 8)         # b1   : (h1, 1) column
    r_b2 = r_b1 + _round_up(h1, 8)         # b2   : (h2, 1) column
    r_b3 = r_b2 + _round_up(h2, 8)         # b3   : (1, 1)
    rows = _round_up(r_b3 + 1, 8)
    return dict(w1=r_w1, w2=r_w2, w3=r_w3, b1=r_b1, b2=r_b2, b3=r_b3, rows=rows)


def _pack_params(w1, b1, w2, b2, w3, b3):
    d_in, h1 = w1.shape
    _, h2 = w2.shape
    offs = _param_offsets(d_in, h1, h2)
    p = jnp.zeros((offs["rows"], _PARAM_LANES), jnp.float32)
    p = p.at[offs["w1"]:offs["w1"] + h1, :d_in].set(w1.T.astype(jnp.float32))
    p = p.at[offs["w2"]:offs["w2"] + h2, :h1].set(w2.T.astype(jnp.float32))
    p = p.at[offs["w3"]:offs["w3"] + h2, :1].set(w3.astype(jnp.float32).reshape(h2, 1))
    p = p.at[offs["b1"]:offs["b1"] + h1, :1].set(b1.astype(jnp.float32).reshape(h1, 1))
    p = p.at[offs["b2"]:offs["b2"] + h2, :1].set(b2.astype(jnp.float32).reshape(h2, 1))
    p = p.at[offs["b3"]:offs["b3"] + 1, :1].set(b3.astype(jnp.float32).reshape(1, 1))
    return p, offs


# ---------------------------------------------------------------------------
# Kernel factory.  Compute is feature-major (batch on the lane axis):
#   x block  : (TB, d_in)  -- streamed batch-major, transposed per chunk in-kernel
#   out block: (1,  TB)    -- lane-dense stores
# The inner loop walks the batch tile in lane-chunks of `chunk`.
# ---------------------------------------------------------------------------
def _make_mlp_kernel(d_in, h1, h2, offs, chunk, n_chunks):
    def kernel(x_ref, p_ref, o_ref):
        # Packed parameters: fetched once (constant index_map), sliced statically.
        w1T = p_ref[offs["w1"]:offs["w1"] + h1, :d_in]       # (h1, d_in)
        w2T = p_ref[offs["w2"]:offs["w2"] + h2, :h1]         # (h2, h1)
        # Lane-broadcasts hoisted out of the chunk loop (VALU-bound inner loop;
        # broadcast_in_dim is not CSE'd by JAX).
        w3b = jnp.broadcast_to(p_ref[offs["w3"]:offs["w3"] + h2, :1], (h2, chunk))
        b1b = jnp.broadcast_to(p_ref[offs["b1"]:offs["b1"] + h1, :1], (h1, chunk))
        b2b = jnp.broadcast_to(p_ref[offs["b2"]:offs["b2"] + h2, :1], (h2, chunk))
        b3b = jnp.broadcast_to(p_ref[offs["b3"]:offs["b3"] + 1, :1], (1, chunk))

        def body(start):
            # (chunk, d_in) batch-major slice -> (d_in, chunk) feature-major.
            # The tiny transpose rides the XLU, which has slack under this loop.
            xs = jnp.transpose(x_ref[pl.ds(start, chunk), :])

            a1 = _leaky_relu(
                jnp.dot(w1T, xs, preferred_element_type=jnp.float32) + b1b)   # (h1, chunk)
            a2 = _leaky_relu(
                jnp.dot(w2T, a1, preferred_element_type=jnp.float32) + b2b)   # (h2, chunk)

            # Final Linear(h2, 1): VPU multiply + sublane (XLU) reduction.
            # Result is a lane-dense (1, chunk) row -> unmasked vst.
            y = jnp.sum(a2 * w3b, axis=0, keepdims=True) + b3b
            o_ref[:, pl.ds(start, chunk)] = y

        if n_chunks == 1:
            body(0)
        else:
            @pl.loop(0, n_chunks)
            def _(c):
                body(pl.multiple_of(c * chunk, chunk))

    return kernel


# ---------------------------------------------------------------------------
# Wrapper: x is [batch, features] (PyTorch layout), weights [in, out],
# biases [1, out].  No wrapper-side transpose/pad pass of x.
# ---------------------------------------------------------------------------
def mlp_forward(x, w1, b1, w2, b2, w3, b3, *,
                block_batch=16384, chunk=128, min_grid_steps=8):
    B, d_in = x.shape
    h1 = w1.shape[1]
    h2 = w2.shape[1]
    d_out = w3.shape[1]
    assert d_out == 1, "kernel is specialized for the regression head (d_out == 1)"
    assert max(d_in, h1, h2) <= _PARAM_LANES

    x = x.astype(jnp.float32)   # no-op for f32 inputs; NO transpose / pad pass
    params, offs = _pack_params(w1, b1, w2, b2, w3, b3)

    chunk = max(128, _round_up(chunk, 128))

    if B <= chunk:
        # Tiny batch: one block covering the full arrays (block dims equal the
        # array dims, so no (8,128) divisibility constraints apply).
        TB = chunk_eff = B
        n_chunks = 1
    else:
        chunk_eff = chunk
        # Batch tile: a multiple of chunk, capped by block_batch, and small enough
        # to give >= min_grid_steps grid steps (v7x core sharding + DMA overlap).
        tb_cap = max(chunk, _round_up(block_batch, chunk))
        tb_steps = _round_up(_cdiv(B, min_grid_steps), chunk)
        TB = max(chunk, min(tb_cap, tb_steps))
        n_chunks = TB // chunk
    grid = (_cdiv(B, TB),)

    kernel = _make_mlp_kernel(d_in, h1, h2, offs, chunk_eff, n_chunks)

    out = pl.pallas_call(
        kernel,
        out_shape=jax.ShapeDtypeStruct((1, B), jnp.float32),
        grid=grid,
        in_specs=[
            pl.BlockSpec((TB, d_in), lambda i: (i, 0)),      # streamed batch-major x
            pl.BlockSpec(params.shape, lambda i: (0, 0)),    # resident packed params
        ],
        out_specs=pl.BlockSpec((1, TB), lambda i: (0, i)),   # lane-dense output row
        compiler_params=pltpu.CompilerParams(
            dimension_semantics=("parallel",),               # v7x: shard over both TCs
        ),
    )(x, params)

    # Ragged tail: Pallas drops out-of-range columns of the last (1, TB) block on
    # writeback, so no explicit masking / padding of x or out is needed.
    # (1, B) -> (B, 1) is an order-preserving, metadata-only reshape.
    return out.reshape(B, d_out)


# ---------------------------------------------------------------------------
# Reference + init helpers
# ---------------------------------------------------------------------------
def init_linear(key, d_in, d_out):
    """Mimics torch.nn.Linear default init: U(-1/sqrt(d_in), 1/sqrt(d_in))."""
    kw, kb = jax.random.split(key)
    bound = 1.0 / jnp.sqrt(jnp.float32(d_in))
    w = jax.random.uniform(kw, (d_in, d_out), jnp.float32, -bound, bound)
    b = jax.random.uniform(kb, (1, d_out), jnp.float32, -bound, bound)
    return w, b


def reference_forward(x, w1, b1, w2, b2, w3, b3):
    def lrelu(h):
        return jnp.where(h > 0, h, LEAKY_SLOPE * h)
    a1 = lrelu(x @ w1 + b1)
    a2 = lrelu(a1 @ w2 + b2)
    return a2 @ w3 + b3


if __name__ == "__main__":
    # layer_size = [8, 32, 32, 1], layer_count = 2
    D_IN, H1, H2, D_OUT = 8, 32, 32, 1
    BATCH = 300  # deliberately NOT a multiple of the tile: exercises ragged blocks

    root = jax.random.PRNGKey(0)
    kx, k1, k2, k3 = jax.random.split(root, 4)

    x = jax.random.normal(kx, (BATCH, D_IN), jnp.float32)
    w1, b1 = init_linear(k1, D_IN, H1)
    w2, b2 = init_linear(k2, H1, H2)
    w3, b3 = init_linear(k3, H2, D_OUT)

    y_ref = reference_forward(x, w1, b1, w2, b2, w3, b3)

    # Multi-step grid + ragged final block.
    y = jax.block_until_ready(mlp_forward(x, w1, b1, w2, b2, w3, b3, chunk=128))
    assert y.shape == (BATCH, D_OUT)
    assert jnp.allclose(y, y_ref, atol=1e-4, rtol=1e-4), "mismatch (chunk=128 path)"

    # Wider inner chunk (sweep candidate from the perf review).
    y2 = jax.block_until_ready(mlp_forward(x, w1, b1, w2, b2, w3, b3, chunk=256))
    assert jnp.allclose(y2, y_ref, atol=1e-4, rtol=1e-4), "mismatch (chunk=256 path)"

    # Tiny batch: single full-array-block path.
    y3 = jax.block_until_ready(mlp_forward(x[:16], w1, b1, w2, b2, w3, b3))
    assert jnp.allclose(y3, y_ref[:16], atol=1e-4, rtol=1e-4), "mismatch (small-batch path)"

    # Note: matmuls use the default TPU f32 precision (multi-pass bf16 on the MXU);
    # this meets the 1e-4 tolerance vs the f32 reference for this model size.
    # TODO(synk): Dropout (p=0 for dropout_mode='false') is treated as identity;
    # stochastic dropout modes ('true_every'/'true_last', p=0.5) are not implemented.
    print("KERNEL_OK")
</pallas_src>

<mosaic_0001>
module attributes {stable_mosaic.version = 11 : i64} {
  func.func @kernel(%arg0: i32, %arg1: memref<128x8xf32, #tpu.memory_space<vmem>>, %arg2: memref<168x128xf32, #tpu.memory_space<vmem>>, %arg3: memref<1x128xf32, #tpu.memory_space<vmem>>) attributes {dimension_semantics = [#tpu.dimension_semantics<parallel>], iteration_bounds = array<i64: 3>, scalar_prefetch = 0 : i64, scratch_operands = 0 : i64, tpu.core_type = #tpu.core_type<tc>, window_params = [{transform_indices = @transform_0, window_bounds = array<i64: 128, 8>}, {pipeline_mode = #tpu.pipeline_mode<synchronous>, transform_indices = @transform_1, window_bounds = array<i64: 168, 128>}, {transform_indices = @transform_2, window_bounds = array<i64: 1, 128>}]} {
    %c0 = arith.constant 0 : index
    %c0_0 = arith.constant 0 : index
    %0 = vector.load %arg2[%c0, %c0_0] : memref<168x128xf32, #tpu.memory_space<vmem>>, vector<32x8xf32>
    %c32 = arith.constant 32 : index
    %c0_1 = arith.constant 0 : index
    %1 = vector.load %arg2[%c32, %c0_1] : memref<168x128xf32, #tpu.memory_space<vmem>>, vector<32x32xf32>
    %c64 = arith.constant 64 : index
    %c0_2 = arith.constant 0 : index
    %2 = vector.load %arg2[%c64, %c0_2] : memref<168x128xf32, #tpu.memory_space<vmem>>, vector<32x1xf32>
    %3 = vector.shape_cast %2 : vector<32x1xf32> to vector<32x1xf32>
    %4 = vector.broadcast %3 : vector<32x1xf32> to vector<32x128xf32>
    %c96 = arith.constant 96 : index
    %c0_3 = arith.constant 0 : index
    %5 = vector.load %arg2[%c96, %c0_3] : memref<168x128xf32, #tpu.memory_space<vmem>>, vector<32x1xf32>
    %6 = vector.shape_cast %5 : vector<32x1xf32> to vector<32x1xf32>
    %7 = vector.broadcast %6 : vector<32x1xf32> to vector<32x128xf32>
    %c128 = arith.constant 128 : index
    %c0_4 = arith.constant 0 : index
    %8 = vector.load %arg2[%c128, %c0_4] : memref<168x128xf32, #tpu.memory_space<vmem>>, vector<32x1xf32>
    %9 = vector.shape_cast %8 : vector<32x1xf32> to vector<32x1xf32>
    %10 = vector.broadcast %9 : vector<32x1xf32> to vector<32x128xf32>
    %c160 = arith.constant 160 : index
    %c0_5 = arith.constant 0 : index
    %11 = vector.load %arg2[%c160, %c0_5] : memref<168x128xf32, #tpu.memory_space<vmem>>, vector<1x1xf32>
    %12 = vector.shape_cast %11 : vector<1x1xf32> to vector<1x1xf32>
    %13 = vector.broadcast %12 : vector<1x1xf32> to vector<1x128xf32>
    %c0_6 = arith.constant 0 : index
    %c0_7 = arith.constant 0 : index
    %14 = vector.load %arg1[%c0_6, %c0_7] : memref<128x8xf32, #tpu.memory_space<vmem>>, vector<128x8xf32>
    %15 = tpu.transpose %14, [1, 0] : vector<128x8xf32> -> vector<8x128xf32>
    %cst = arith.constant dense<0.000000e+00> : vector<32x128xf32>
    %16 = tpu.matmul %0, %15, %cst {dimension_numbers = #tpu.dot_dimension_numbers<[1], [0], [0], [1], [0, 0, 1, 1], [], []>} : vector<32x8xf32>, vector<8x128xf32>, vector<32x128xf32> -> vector<32x128xf32>
    %17 = arith.addf %16, %7 : vector<32x128xf32>
    %cst_8 = arith.constant 0.00999999977 : f32
    %18 = vector.broadcast %cst_8 : f32 to vector<32x128xf32>
    %19 = arith.mulf %18, %17 : vector<32x128xf32>
    %20 = arith.maximumf %17, %19 : vector<32x128xf32>
    %cst_9 = arith.constant dense<0.000000e+00> : vector<32x128xf32>
    %21 = tpu.matmul %1, %20, %cst_9 {dimension_numbers = #tpu.dot_dimension_numbers<[1], [0], [0], [1], [0, 0, 1, 1], [], []>} : vector<32x32xf32>, vector<32x128xf32>, vector<32x128xf32> -> vector<32x128xf32>
    %22 = arith.addf %21, %10 : vector<32x128xf32>
    %cst_10 = arith.constant 0.00999999977 : f32
    %23 = vector.broadcast %cst_10 : f32 to vector<32x128xf32>
    %24 = arith.mulf %23, %22 : vector<32x128xf32>
    %25 = arith.maximumf %22, %24 : vector<32x128xf32>
    %26 = arith.mulf %25, %4 : vector<32x128xf32>
    %cst_11 = arith.constant dense<0.000000e+00> : vector<128xf32>
    %27 = vector.multi_reduction <add>, %26, %cst_11 [0] : vector<32x128xf32> to vector<128xf32>
    %28 = vector.shape_cast %27 : vector<128xf32> to vector<1x128xf32>
    %29 = arith.addf %28, %13 : vector<1x128xf32>
    %c0_12 = arith.constant 0 : index
    %c0_13 = arith.constant 0 : index
    %30 = vector.load %arg3[%c0_12, %c0_13] : memref<1x128xf32, #tpu.memory_space<vmem>>, vector<1x128xf32>
    tpu.vector_store %arg3[%c0_12, %c0_13], %29 {strides = array<i32>} : memref<1x128xf32, #tpu.memory_space<vmem>>, vector<1x128xf32>,
    return
  }
  func.func @transform_0(%arg0: i32) -> (i32, i32) {
    %c0_i32 = arith.constant 0 : i32
    %c0_i32_0 = arith.constant 0 : i32
    return %arg0, %c0_i32 : i32, i32
  }
  func.func @transform_1(%arg0: i32) -> (i32, i32) {
    %c0_i32 = arith.constant 0 : i32
    %c0_i32_0 = arith.constant 0 : i32
    %c0_i32_1 = arith.constant 0 : i32
    return %c0_i32, %c0_i32_0 : i32, i32
  }
  func.func @transform_2(%arg0: i32) -> (i32, i32) {
    %c0_i32 = arith.constant 0 : i32
    %c0_i32_0 = arith.constant 0 : i32
    return %c0_i32, %arg0 : i32, i32
  }
}

</mosaic_0001>

<bundles_post_ra>
// kernel: tpu_custom_call.1
= control target key start
LH: loop header
LB: loop body
LE: loop exit
PB: predicated region body
PF: predicated region fallthrough
CT: control target
= control target key end

     0   :  { %7 = vsyncpa [#allocation3], 0  ;;  %s1126_s0 = inlined_call_operand.vmem [shape: f32[300,8], index: 0, kind: input, shape index: {}]   ;;  %s1127_s1 = inlined_call_operand.vmem [shape: f32[168,128], index: 1, kind: input, shape index: {}]   ;;  %s1128_s2 = inlined_call_operand.hbm [shape: f32[1,300], index: 2, kind: output, shape index: {}]  }
   0x1   :  { %9 = vsyncpa [#allocation3 + $0x1], 0  ;;  %s900_s9 = smov 0   ;;  %s902_s10 = smov 0  }
   0x2   :  { %s904_s11 = smov 0   ;;  %s906_s12 = smov 0  }
   0x3 LB: > { %s607_s13 = sadd.s32 4294967295, %s881_s12   ;;  %s608_s14 = sadd.s32 4294967294, %s881_s12   ;;  %s881_s12 = sphi %s906_s12, %s1136_s12   ;;  %s877_s11 = sphi %s904_s11, %s1135_s11   ;;  %s873_s10 = sphi %s902_s10, %s1134_s10   ;;  %s869_s9 = sphi %s900_s9, %s1133_s9  }
   0x4   : > { %s923_s15 = sadd.s32 1, %s881_s12   ;;  %s69_s16 = sadd.s32 1, %s877_s11 }
   0x5   : > { %s66_s17 = ssub.s32 %s881_s12, %s923_s15  ;;  %p79_p0 = scmp.ne.s32.totalorder %s877_s11, %s873_s10 }
   0x6   : > { %p67_p1 = scmp.eq.s32.totalorder %s66_s17, 0  ;;  %p80_p2 = scmp.eq.s32.totalorder %s607_s13, 2 }
   0x7   : > { %p85_p3 = scmp.ne.s32.totalorder %s873_s10, %s869_s9  ;;  %p86_p4 = scmp.eq.s32.totalorder %s608_s14, 2 }
   0x8   : > { %s933_s18 = scalar_select %p67_p1, %s877_s11, %s69_s16  }
   0x9   : > { %p935_p5 = por %p80_p2, %p79_p0  ;;  %p939_p6 = por %p86_p4, %p85_p3 }
   0xa   : > { %p611_p7 = scmp.ge.s32.totalorder %s881_s12, 1  ;;  %p124_p8 = scmp.lt.s32.totalorder %s881_s12, 4 }
   0xc   : > { %p125_p9 = pnand %p611_p7, %p124_p8 }
   0xd   : > { %s945_s21 = sshll.u32 (!%p125_p9), %s607_s13, 4  ;;  %vm265_vm0 = vcmask (!%p125_p9), 64512   ;;  %v163_v0 = vld [vmem:[%s1127_s1] sm:$0xff] (!%p125_p9)  ;;  %v883_v1 = vmov (!%p125_p9), 0   ;;  %v197_v3 = vld [vmem:[%s1127_s1 + $0x70] sm:$0xff] (!%p125_p9)  ;;  %v196_v4 = vld [vmem:[%s1127_s1 + $0x68] sm:$0xff] (!%p125_p9) }
   0xe   : > { %128 = sbr.rel (%p125_p9) target bundleno = 578 (0x242), region = 28  ;;  %p154_p10 = scmp.lt.s32.totalorder (!%p125_p9), %s945_s21, 37  ;;  %701 = vmatprep.mubr.msk.f32.mxu0 (!%p125_p9), %vm265_vm0, %v163_v0  ;;  %817 = vset.pattern.permute.xlu0 (!%p125_p9), %v883_v1  ;;  %v195_v2 = vld [vmem:[%s1127_s1 + $0x60] sm:$0xff] (!%p125_p9)  ;;  %v198_v5 = vld [vmem:[%s1127_s1 + $0x78] sm:$0xff] (!%p125_p9)  ;;  %vm972_vm1 = vmpackc.low (!%p125_p9), %vm265_vm0, %vm265_vm0  ;;  %vm419_vm2 = vcmask (!%p125_p9), 261120  }
   0xf   : > { %201 = vperm.xlu0 (!%p125_p9), %817, %v195_v2   ;;  %818 = vset.pattern.permute.xlu1 (!%p125_p9), %v883_v1  ;;  %v219_v7 = vld [vmem:[%s1127_s1 + $0x80] sm:$0xff] (!%p125_p9)  ;;  %v220_v13 = vld [vmem:[%s1127_s1 + $0x88] sm:$0xff] (!%p125_p9)  ;;  %v221_v15 = vld [vmem:[%s1127_s1 + $0x90] sm:$0xff] (!%p125_p9)  ;;  %s147_s3 = sand.u32 (!%p125_p9), 1, %s873_s10   ;;  %s1084_s13 = scalar_lea.hbm (!%p125_p9), %s1128_s2, %s945_s21 }
  0x10   : > { %211 = vperm.xlu1 (!%p125_p9), %818, %v197_v3   ;;  %v222_v16 = vld [vmem:[%s1127_s1 + $0x98] sm:$0xff] (!%p125_p9)  ;;  %v171_v19 = vld [vmem:[%s1127_s1 + $0x40] sm:$0xff] (!%p125_p9)  ;;  %v172_v21 = vld [vmem:[%s1127_s1 + $0x48] sm:$0xff] (!%p125_p9)  ;;  %s148_s4 = scalar_lea.vmem (!%p125_p9), [#allocation2], %s147_s3  ;;  %s541_s14 = scalar_lea.sflag (!%p125_p9), [#allocation3], %s147_s3 }
  0x11   : > { %v173_v22 = vld [vmem:[%s1127_s1 + $0x50] sm:$0xff] (!%p125_p9)  ;;  %v174_v23 = vld [vmem:[%s1127_s1 + $0x58] sm:$0xff] (!%p125_p9)  ;;  %v243_v26 = vld [vmem:[%s1127_s1 + $0xa0] sm:$0x1] (!%p125_p9)  ;;  %s884_s17 = smov (!%p125_p9), [#allocation2]  }
  0x12   : > { %v164_v40 = vld [vmem:[%s1127_s1 + $0x8] sm:$0xff] (!%p125_p9)  ;;  %v165_v41 = vld [vmem:[%s1127_s1 + $0x10] sm:$0xff] (!%p125_p9)  ;;  %v166_v42 = vld [vmem:[%s1127_s1 + $0x18] sm:$0xff] (!%p125_p9) }
  0x13   : > { %206 = vperm.xlu0 (!%p125_p9), %817, %v196_v4   ;;  %v167_v43 = vld [vmem:[%s1127_s1 + $0x20] sm:$0xff] (!%p125_p9)  ;;  %v168_v2 = vld [vmem:[%s1127_s1 + $0x28] sm:$0xff] (!%p125_p9)  ;;  %v169_v3 = vld [vmem:[%s1127_s1 + $0x30] sm:$0xff] (!%p125_p9) }
  0x14   : > { %216 = vperm.xlu1 (!%p125_p9), %818, %v198_v5   ;;  %715 = vmatprep.mubr.msk.f32.mxu1 (!%p125_p9), %vm419_vm2, %v167_v43  ;;  %v170_v4 = vld [vmem:[%s1127_s1 + $0x38] sm:$0xff] (!%p125_p9) }
  0x15   : > { %s155_s28 = scalar_select %p154_p10, %s945_s21, 37 }
  0x17   : > { %s613_s5 = sshll.u32 %s155_s28, 3  ;;  %225 = vperm.xlu0 %817, %v219_v7  }
  0x18   : > { %s968_s8 = scalar_lea.vmem %s1126_s0, %s613_s5  ;;  %230 = vperm.xlu1 %818, %v220_v13   ;;  %s553_s5 = sshll.u32 %s148_s4, 4  ;;  %s1086_s5 = int_to_ptr.vmem [resolvable:$true] %s553_s5 }
  0x19   : > { %v249_v8 = vld [vmem:[%s968_s8] sm:$0xff]  ;;  %v250_v9 = vld [vmem:[%s968_s8 + $0x8] sm:$0xff]  ;;  %v251_v10 = vld [vmem:[%s968_s8 + $0x10] sm:$0xff]  ;;  %s819_s16 = scalar_lea.vmem %s1086_s5, 16 }
  0x1a   : > { %v721_v11 = vpack.c.bf16 %v250_v9, %v249_v8  ;;  %v252_v12 = vld [vmem:[%s968_s8 + $0x18] sm:$0xff]  ;;  %v253_v17 = vld [vmem:[%s968_s8 + $0x20] sm:$0xff]  ;;  %v254_v18 = vld [vmem:[%s968_s8 + $0x28] sm:$0xff]  ;;  %p820_p11 = scmp.ne.s32.totalorder %s1086_s5, %s819_s16 }
  0x1b   : > { %v727_v14 = vpack.c.bf16 %v252_v12, %v251_v10  ;;  %235 = vperm.xlu0 %817, %v221_v15   ;;  %v733_v20 = vpack.c.bf16 %v254_v18, %v253_v17  ;;  %v255_v24 = vld [vmem:[%s968_s8 + $0x30] sm:$0xff]  ;;  %v256_v25 = vld [vmem:[%s968_s8 + $0x38] sm:$0xff]  ;;  %v257_v28 = vld [vmem:[%s968_s8 + $0x40] sm:$0xff] }
  0x1c   : > { %723 = vmatprep.subr.msk.bf16.mxu0 %vm972_vm1, %v721_v11  ;;  %240 = vperm.xlu1 %818, %v222_v16   ;;  %v739_v27 = vpack.c.bf16 %v256_v25, %v255_v24  ;;  %v258_v29 = vld [vmem:[%s968_s8 + $0x48] sm:$0xff]  ;;  %v259_v31 = vld [vmem:[%s968_s8 + $0x50] sm:$0xff]  ;;  %v260_v32 = vld [vmem:[%s968_s8 + $0x58] sm:$0xff]  ;;  %p821_p12 = pnand %p820_p11, %p935_p5 }
  0x1d   : > { %726 = vmatpush3.bf16.xpose.msk.msra.mxu0 %vm972_vm1, %v721_v11  ;;  %v745_v30 = vpack.c.bf16 %v258_v29, %v257_v28  ;;  %v751_v33 = vpack.c.bf16 %v260_v32, %v259_v31  ;;  %v261_v34 = vld [vmem:[%s968_s8 + $0x60] sm:$0xff]  ;;  %v262_v35 = vld [vmem:[%s968_s8 + $0x68] sm:$0xff]  ;;  %v263_v37 = vld [vmem:[%s968_s8 + $0x70] sm:$0xff] }
  0x1e   : > { %729 = vmatprep.subr.msk.bf16.mxu0 %vm972_vm1, %v727_v14  ;;  %v757_v36 = vpack.c.bf16 %v262_v35, %v261_v34  ;;  %v264_v38 = vld [vmem:[%s968_s8 + $0x78] sm:$0xff]  ;;  %p822_p13 = pneg %p821_p12  ;;  %s823_s8 = sshll.u32 %s884_s17, 4  ;;  %s824_s8 = int_to_ptr.vmem [resolvable:$false] %s823_s8 }
  0x1f   : > { %177 = vperm.xlu0 %817, %v171_v19   ;;  %v763_v39 = vpack.c.bf16 %v264_v38, %v263_v37  ;;  %s825_s22 = scalar_lea.vmem %s824_s8, 32  ;;  %p826_p0 = scmp.lt.s32.totalorder %s1086_s5, %s824_s8 }
  0x20   : > { %182 = vperm.xlu1 %818, %v172_v21   ;;  %p827_p1 = scmp.lt.s32.totalorder %s825_s22, %s819_s16 }
  0x22   : > { %p828_p2 = por %p827_p1, %p826_p0 }
  0x23   : > { %187 = vperm.xlu0 %817, %v173_v22  }
  0x24   : > { %192 = vperm.xlu1 %818, %v174_v23   ;;  %p829_p3 = pnand %p828_p2, %p822_p13 }
  0x25   : > { %732 = vmatpush3.bf16.xpose.msk.msra.mxu0 %vm972_vm1, %v727_v14 }
  0x26   : > { %735 = vmatprep.subr.msk.bf16.mxu0 %vm972_vm1, %v733_v20 }
  0x27   : > { %246 = vperm.xlu0 %817, %v243_v26  }
  0x2d   : > { %738 = vmatpush3.bf16.xpose.msk.msra.mxu0 %vm972_vm1, %v733_v20 }
  0x2e   : > { %741 = vmatprep.subr.msk.bf16.mxu0 %vm972_vm1, %v739_v27 }
  0x35   : > { %744 = vmatpush3.bf16.xpose.msk.msra.mxu0 %vm972_vm1, %v739_v27 }
  0x36   : > { %747 = vmatprep.subr.msk.bf16.mxu0 %vm972_vm1, %v745_v30 }
  0x3d   : > { %750 = vmatpush3.bf16.xpose.msk.msra.mxu0 %vm972_vm1, %v745_v30 }
  0x3e   : > { %753 = vmatprep.subr.msk.bf16.mxu0 %vm972_vm1, %v751_v33 }
  0x45   : > { %756 = vmatpush3.bf16.xpose.msk.msra.mxu0 %vm972_vm1, %v751_v33 }
  0x46   : > { %759 = vmatprep.subr.msk.bf16.mxu0 %vm972_vm1, %v757_v36 }
  0x4d   : > { %762 = vmatpush3.bf16.xpose.msk.msra.mxu0 %vm972_vm1, %v757_v36 }
  0x4e   : > { %765 = vmatprep.subr.msk.bf16.mxu0 %vm972_vm1, %v763_v39 }
  0x55   : > { %768 = vmatpush3.bf16.xpose.msk.msra.mxu0 %vm972_vm1, %v763_v39 }
  0x5c   : > { %702 = vmatmul.mubr.msk.f32.vlgmr.msra.gmra.mrb[0].mxu0 %vm265_vm0, %v164_v40 }
  0x5d   : > { %704 = vmatprep.mubr.msk.f32.mxu0 %vm265_vm0, %v165_v41 }
  0x60   : > { %705 = vmatmul.mubr.msk.f32.gmra.mrb[2].mxu0 %vm265_vm0, %v166_v42 }
  0x8e   : > { %v202_v44 = vpop.permute.xlu0 %201 }
  0x8f   : > { %v212_v45 = vpop.permute.xlu1 %211 }
  0x92   : > { %v207_v46 = vpop.permute.xlu0 %206 }
  0x93   : > { %v217_v52 = vpop.permute.xlu1 %216 }
  0x96   : > { %v226_v5 = vpop.permute.xlu0 %225 }
  0x97   : > { %v231_v6 = vpop.permute.xlu1 %230 }
  0x9a   : > { %v236_v7 = vpop.permute.xlu0 %235 }
  0x9b   : > { %v241_v8 = vpop.permute.xlu1 %240 }
  0x9e   : > { %v178_v16 = vpop.permute.xlu0 %177 }
  0x9f   : > { %v183_v20 = vpop.permute.xlu1 %182 }
  0xa2   : > { %v188_v30 = vpop.permute.xlu0 %187 }
  0xa3   : > { %v193_v32 = vpop.permute.xlu1 %192 }
  0xa6   : > { %v247_v42 = vpop.permute.xlu0 %246 }
 0x12f   : > { %v703_v47 = vpop.f32.mrb[0].mxu0 }
 0x130   : > { %v398_v48 = vadd.f32 %v703_v47, %v207_v46  ;;  %v392_v49 = vpop.f32.mrb[1].mxu0 }
 0x131   : > { %v393_v50 = vadd.f32 %v392_v49, %v202_v44 }
 0x132   : > { %v412_v51 = vmul.f32 0.01, %v398_v48 }
 0x133   : > { %v411_v53 = vmul.f32 0.01, %v393_v50  ;;  %v706_v54 = vpop.f32.mrb[2].mxu0 }
 0x134   : > { %v416_v55 = vmax.f32 %v398_v48, %v412_v51  ;;  %v408_v56 = vadd.f32 %v706_v54, %v217_v52  ;;  %v402_v57 = vpop.f32.mrb[3].mxu0 }
 0x135   : > { %v415_v58 = vmax.f32 %v393_v50, %v411_v53  ;;  %v403_v59 = vadd.f32 %v402_v57, %v212_v45 }
 0x136   : > { %v414_v60 = vmul.f32 0.01, %v408_v56 }
 0x137   : > { %v413_v61 = vmul.f32 0.01, %v403_v59  ;;  %v769_v62 = vpack.c.bf16 %v416_v55, %v415_v58 }
 0x138   : > { %v418_v63 = vmax.f32 %v408_v56, %v414_v60 }
 0x139   : > { %v417_v0 = vmax.f32 %v403_v59, %v413_v61  ;;  %770 = vmatprep.subr.bf16.mxu1 %v769_v62 }
 0x13a   : > { %772 = vmatpush3.bf16.msra.mxu1 %v769_v62 }
 0x13b   : > { %v773_v1 = vpack.c.bf16 %v418_v63, %v417_v0 }
 0x13d   : > { %774 = vmatprep.subr.bf16.mxu1 %v773_v1 }
 0x13e   : > { %776 = vmatpush3.bf16.msra.mxu1 %v773_v1 }
 0x141   : > { %716 = vmatmul.mubr.msk.f32.vlgmr.msra.gmra.mrb[0].mxu1 %vm419_vm2, %v168_v2 }
 0x142   : > { %718 = vmatprep.mubr.msk.f32.mxu1 %vm419_vm2, %v169_v3 }
 0x145   : > { %719 = vmatmul.mubr.msk.f32.gmra.mrb[2].mxu1 %vm419_vm2, %v170_v4 }
 0x214   : > { %v717_v9 = vpop.f32.mrb[0].mxu1 }
 0x215   : > { %v504_v10 = vadd.f32 %v717_v9, %v231_v6  ;;  %v498_v11 = vpop.f32.mrb[1].mxu1 }
 0x216   : > { %v499_v12 = vadd.f32 %v498_v11, %v226_v5 }
 0x217   : > { %v518_v13 = vmul.f32 0.01, %v504_v10 }
 0x218   : > { %v517_v14 = vmul.f32 0.01, %v499_v12  ;;  %v720_v15 = vpop.f32.mrb[2].mxu1 }
 0x219   : > { %v522_v17 = vmax.f32 %v504_v10, %v518_v13  ;;  %v514_v18 = vadd.f32 %v720_v15, %v241_v8  ;;  %v508_v19 = vpop.f32.mrb[3].mxu1 }
 0x21a   : > { %v521_v21 = vmax.f32 %v499_v12, %v517_v14  ;;  %v509_v22 = vadd.f32 %v508_v19, %v236_v7 }
 0x21b   : > { %v526_v23 = vmul.f32 %v522_v17, %v183_v20  ;;  %v520_v24 = vmul.f32 0.01, %v514_v18 }
 0x21c   : > { %v525_v25 = vmul.f32 %v521_v21, %v178_v16  ;;  %v519_v26 = vmul.f32 0.01, %v509_v22 }
 0x21d   : > { %v524_v28 = vmax.f32 %v514_v18, %v520_v24 }
 0x21e   : > { %v529_v27 = vadd.f32 %v526_v23, %v525_v25  ;;  %v523_v29 = vmax.f32 %v509_v22, %v519_v26 }
 0x21f   : > { %v528_v33 = vmul.f32 %v524_v28, %v193_v32 }
 0x220   : > { %v527_v31 = vmul.f32 %v523_v29, %v188_v30 }
 0x222   : > { %v530_v34 = vadd.f32 %v529_v27, %v527_v31 }
 0x224   : > { %v531_v35 = vadd.f32 %v530_v34, %v528_v33 }
 0x226   : > { %v532_v36 = vrot.slane %v531_v35, 4 }
 0x228   : > { %v533_v37 = vadd.f32 %v532_v36, %v531_v35 }
 0x22a   : > { %v534_v38 = vrot.slane %v533_v37, 2 }
 0x22c   : > { %v535_v39 = vadd.f32 %v534_v38, %v533_v37 }
 0x22e   : > { %v536_v40 = vrot.slane %v535_v39, 1 }
 0x230   : > { %v537_v41 = vadd.f32 %v536_v40, %v535_v39 }
 0x232   : > { %v538_v43 = vadd.f32 %v537_v41, %v247_v42 }
 0x234   : > { %539 = vst [vmem:[%s148_s4] sm:$0x1] %v538_v43 }
 0x235   : > { %832 = shalt.err (!%p829_p3)
}
 0x236   : > { %s833_s21 = scalar_lea.hbm %s1084_s13, 16  ;;  %s837_s25 = scalar_lea.hbm %s1128_s2, 48 }
 0x237   : > { %p834_p4 = scmp.ne.s32.totalorder %s1084_s13, %s833_s21  ;;  %p838_p9 = scmp.lt.u32.totalorder %s1084_s13, %s1128_s2 }
 0x238   : > { %p839_p10 = scmp.lt.u32.totalorder %s837_s25, %s833_s21  ;;  %p841_p12 = scmp.lt.u32.totalorder %s833_s21, %s1084_s13 }
 0x239   : > { %p835_p7 = pnand %p834_p4, %p935_p5 }
 0x23a   : > { %p840_p11 = por %p839_p10, %p838_p9 }
 0x23b   : > { %p836_p8 = pneg %p835_p7 }
 0x23c   : > { %p842_p13 = por %p841_p12, %p840_p11 }
 0x23e   : > { %p843_p0 = pnand %p842_p13, %p836_p8 }
 0x240   : > { %846 = shalt.err (!%p843_p0)
}
 0x241   : > { %777 = dma.vmem_to_hbm [thread:$0]  (%p935_p5), %s1086_s5, 16, %s1084_s13, %s541_s14  }
 0x242 PF: > { %p783_p1 = scmp.ge.s32.totalorder %s881_s12, 2  ;;  %s565_s28 = sand.u32 1, %s869_s9  }
 0x243   : > { %s566_s29 = scalar_lea.sflag [#allocation3], %s565_s28 }
 0x244   : > { %p780_p2 = pnand %p783_p1, %p939_p6 }
 0x246   : > { %864 = dma.done.wait (!%p780_p2), %s566_s29, 16  }
 0x247   : > { %866 = vsyncadd (!%p780_p2), %s566_s29, 4294967280  ;;  %p12_p3 = scmp.ge.s32.totalorder %s923_s15, 5   ;;  %s1133_s9 = smov %s873_s10 }
 0x248   : > { %s1134_s10 = smov %s877_s11  ;;  %s1135_s11 = smov %s933_s18 }
 0x249   : > { %s1136_s12 = smov %s923_s15  ;;  %14 = sbr.rel (!%p12_p3) target bundleno = 3 (0x3), region = 63 }
 0x250   :  { %570 = vsyncpa [#allocation3], 1 }
 0x251   :  { %572 = vsyncpa [#allocation3 + $0x1], 1 }

</bundles_post_ra>
